<compile_context>
chip_gen: v7x
topology: tpu7x:2x2x1
jax: 0.10.0
libtpu: 0.0.40
codegen_flags: <defaults>
</compile_context>

<pallas_src>
import functools

import jax
import jax.numpy as jnp
from jax import lax
from jax.experimental import pallas as pl
from jax.experimental.pallas import tpu as pltpu


def _round_up(x, m):
    return ((x + m - 1) // m) * m


def _conv_bn_relu_kernel(x_ref, w_ref, o_ref, *, H, W, Cin_p):
    # x_ref: (1, Cin_p, Mt)   f32, NCHW-flat image; channel Cin is constant 1.0
    # w_ref: (Cout_p, 9*Cin_p) bf16, BN scale folded in; BN shift lives on the
    #                          ones-channel column of the center tap
    # o_ref: (1, Cout_p, Mt)  f32 output, NCHW-flat (lane-dense last dim)
    Mt = H * W
    xi = x_ref[0]                                              # (Cin_p, Mt) f32

    # Hoisted index vectors (VPU, ~2 vregs each).
    m_idx = lax.broadcasted_iota(jnp.int32, (Cin_p, Mt), 1)    # flattened pixel idx
    q_idx = m_idx % W                                          # column within row

    blocks = []
    for dy in range(3):
        for dx in range(3):
            oy, ox = dy - 1, dx - 1
            off = oy * W + ox
            # out[m] = x[m + off]  -> roll by -off along the lane axis (XLU).
            shifted = xi if off == 0 else pltpu.roll(xi, shift=(-off) % Mt, axis=1)
            mask = None
            if oy != 0:   # top/bottom image edge
                mask = (m_idx + oy * W >= 0) & (m_idx + oy * W < Mt)
            if ox != 0:   # left/right image edge (also kills roll wrap across rows)
                cmask = (q_idx + ox >= 0) & (q_idx + ox < W)
                mask = cmask if mask is None else (mask & cmask)
            if mask is not None:
                shifted = jnp.where(mask, shifted, 0.0)
            blocks.append(shifted)

    # (9*Cin_p, Mt): each block is whole 8-sublane vregs -> free stacking; one
    # register-level f32 -> bf16 convert for the MXU (no VMEM slab round-trip).
    col = jnp.concatenate(blocks, axis=0).astype(jnp.bfloat16)

    # Single MXU matmul, RHS already (K, Mt) with lane-dense Mt -> no transpose.
    yt = lax.dot_general(w_ref[...], col,
                         dimension_numbers=(((1,), (0,)), ((), ())),
                         preferred_element_type=jnp.float32)   # (Cout_p, Mt)

    # Conv + BN (scale & shift) are already in yt; Dropout(0.2) is identity in eval.
    o_ref[0] = jnp.maximum(yt, 0.0).astype(o_ref.dtype)


def conv_bn_relu_pallas(x_nchw, weight_oihw, gamma, beta, running_mean, running_var,
                        eps=1e-5):
    """Forward of module K (eval mode). x_nchw: (N, Cin, H, W) f32 -> (N, Cout, H, W) f32."""
    N, Cin, H, W = x_nchw.shape
    Cout = weight_oihw.shape[0]
    Mt = H * W
    assert Mt % 128 == 0, "H*W must be a multiple of 128 (lane-dense output)"

    Cin_p = _round_up(Cin + 1, 8)          # +1: constant-ones channel carries the BN shift
    Cout_p = _round_up(Cout, 8)
    Kc = 9 * Cin_p

    # ---- fold BatchNorm (inference form) into weights + shift --------------------
    scale = (gamma / jnp.sqrt(running_var + eps)).astype(jnp.float32)      # (Cout,)
    shift = (beta - running_mean * scale).astype(jnp.float32)              # (Cout,)
    wf = weight_oihw.astype(jnp.float32) * scale[:, None, None, None]      # (Cout,Cin,3,3)

    # Weight matrix (Cout_p, 9*Cin_p); contraction index = (dy*3+dx)*Cin_p + c.
    w_full = jnp.zeros((Cout_p, 3, 3, Cin_p), jnp.float32)
    w_full = w_full.at[:Cout, :, :, :Cin].set(jnp.transpose(wf, (0, 2, 3, 1)))
    # BN shift rides on the ones channel at the center tap (dy=1, dx=1).
    w_full = w_full.at[:Cout, 1, 1, Cin].set(shift)
    w_mat = w_full.reshape(Cout_p, Kc).astype(jnp.bfloat16)

    # NCHW -> (N, Cin_p, H*W): free reshape + channel pad; channel Cin is constant 1.
    x_flat = x_nchw.reshape(N, Cin, Mt).astype(jnp.float32)
    ones_ch = jnp.ones((N, 1, Mt), jnp.float32)
    zero_ch = jnp.zeros((N, Cin_p - Cin - 1, Mt), jnp.float32)
    x_slab = jnp.concatenate([x_flat, ones_ch, zero_ch], axis=1)           # (N,Cin_p,Mt)

    # Explicit VMEM budget: double-buffered in/out blocks + weights + spill headroom.
    x_block = Cin_p * Mt * 4
    o_block = Cout_p * Mt * 4
    w_bytes = Cout_p * Kc * 2
    slab_spill = Kc * Mt * 6                      # f32 + bf16 slab if regalloc spills
    need = 2 * (x_block + o_block + w_bytes) + slab_spill
    vmem_limit = int(min(64 * 1024 * 1024, max(8 * 1024 * 1024, 4 * need)))

    kernel = functools.partial(_conv_bn_relu_kernel, H=H, W=W, Cin_p=Cin_p)

    out_flat = pl.pallas_call(
        kernel,
        out_shape=jax.ShapeDtypeStruct((N, Cout_p, Mt), jnp.float32),
        grid_spec=pltpu.PrefetchScalarGridSpec(
            num_scalar_prefetch=0,
            grid=(N,),
            in_specs=[
                pl.BlockSpec((1, Cin_p, Mt), lambda n: (n, 0, 0)),
                pl.BlockSpec((Cout_p, Kc), lambda n: (0, 0)),
            ],
            out_specs=pl.BlockSpec((1, Cout_p, Mt), lambda n: (n, 0, 0)),
        ),
        compiler_params=pltpu.CompilerParams(
            dimension_semantics=("parallel",),     # shard images across TensorCores
            vmem_limit_bytes=vmem_limit,
        ),
        cost_estimate=pl.CostEstimate(
            flops=2 * N * Mt * Kc * Cout_p,
            transcendentals=0,
            bytes_accessed=x_slab.size * 4 + w_mat.size * 2 + N * Cout_p * Mt * 4,
        ),
    )(x_slab, w_mat)

    out = out_flat.reshape(N, Cout_p, H, W)
    return out[:, :Cout] if Cout_p != Cout else out


def _reference_f32(x, w, gamma, beta, mean, var, eps=1e-5):
    """Exact f32 reference of the PyTorch module (eval mode)."""
    y = lax.conv_general_dilated(
        x, w, window_strides=(1, 1), padding=((1, 1), (1, 1)),
        dimension_numbers=("NCHW", "OIHW", "NCHW"),
        precision=lax.Precision.HIGHEST)
    scale = gamma / jnp.sqrt(var + eps)
    shift = beta - mean * scale
    return jnp.maximum(y * scale[None, :, None, None] + shift[None, :, None, None], 0.0)


def _reference_bf16_consistent(x, w, gamma, beta, mean, var, eps=1e-5):
    """Same op with BN folded into weights and matmul inputs rounded to bf16
    (matching the kernel's MXU precision contract), f32 accumulation."""
    scale = gamma / jnp.sqrt(var + eps)
    shift = beta - mean * scale
    wf = (w * scale[:, None, None, None]).astype(jnp.bfloat16).astype(jnp.float32)
    xb = x.astype(jnp.bfloat16).astype(jnp.float32)
    y = lax.conv_general_dilated(
        xb, wf, window_strides=(1, 1), padding=((1, 1), (1, 1)),
        dimension_numbers=("NCHW", "OIHW", "NCHW"),
        precision=lax.Precision.HIGHEST)
    shift_b = shift.astype(jnp.bfloat16).astype(jnp.float32)
    return jnp.maximum(y + shift_b[None, :, None, None], 0.0)


if __name__ == "__main__":
    key = jax.random.PRNGKey(0)
    k_x, k_w, k_g, k_b, k_m, k_v = jax.random.split(key, 6)

    N, Cin, Cout, H, W = 2, 4, 8, 16, 16

    x = jax.random.normal(k_x, (N, Cin, H, W), dtype=jnp.float32)
    weight = jax.random.normal(k_w, (Cout, Cin, 3, 3), dtype=jnp.float32) * 0.1
    gamma = 1.0 + 0.1 * jax.random.normal(k_g, (Cout,), dtype=jnp.float32)
    beta = 0.1 * jax.random.normal(k_b, (Cout,), dtype=jnp.float32)
    running_mean = 0.05 * jax.random.normal(k_m, (Cout,), dtype=jnp.float32)
    running_var = 1.0 + 0.1 * jax.random.uniform(k_v, (Cout,), dtype=jnp.float32)

    fwd = jax.jit(conv_bn_relu_pallas)
    out = jax.block_until_ready(fwd(x, weight, gamma, beta, running_mean, running_var))
    assert out.shape == (N, Cout, H, W)

    # Tight check against a reference using the same bf16 rounding of the MXU inputs.
    ref_tight = _reference_bf16_consistent(x, weight, gamma, beta, running_mean, running_var)
    assert jnp.allclose(out, ref_tight, rtol=2e-3, atol=2e-3), "mismatch vs bf16-consistent reference"

    # Loose sanity check against the exact f32 module reference.
    ref_f32 = _reference_f32(x, weight, gamma, beta, running_mean, running_var)
    assert jnp.allclose(out, ref_f32, rtol=5e-2, atol=5e-2), "mismatch vs f32 reference"

    print("KERNEL_OK")
</pallas_src>

<mosaic_0001>
module attributes {stable_mosaic.version = 11 : i64} {
  func.func @_conv_bn_relu_kernel(%arg0: i32, %arg1: memref<1x8x256xf32, #tpu.memory_space<vmem>>, %arg2: memref<8x72xbf16, #tpu.memory_space<vmem>>, %arg3: memref<1x8x256xf32, #tpu.memory_space<vmem>>) attributes {dimension_semantics = [#tpu.dimension_semantics<parallel>], iteration_bounds = array<i64: 2>, scalar_prefetch = 0 : i64, scratch_operands = 0 : i64, tpu.core_type = #tpu.core_type<tc>, window_params = [{transform_indices = @transform_0, window_bounds = array<i64: 1, 8, 256>}, {pipeline_mode = #tpu.pipeline_mode<synchronous>, transform_indices = @transform_1, window_bounds = array<i64: 8, 72>}, {transform_indices = @transform_2, window_bounds = array<i64: 1, 8, 256>}]} {
    %c0 = arith.constant 0 : index
    %c0_0 = arith.constant 0 : index
    %c0_1 = arith.constant 0 : index
    %0 = vector.load %arg1[%c0, %c0_0, %c0_1] : memref<1x8x256xf32, #tpu.memory_space<vmem>>, vector<1x8x256xf32>
    %1 = vector.shape_cast %0 : vector<1x8x256xf32> to vector<8x256xf32>
    %2 = tpu.iota {dimensions = array<i32: 1>} : vector<8x256xi32>
    %c16_i32 = arith.constant 16 : i32
    %c0_i32 = arith.constant 0 : i32
    %3 = arith.cmpi eq, %c16_i32, %c0_i32 : i32
    %c1_i32 = arith.constant 1 : i32
    %4 = arith.select %3, %c1_i32, %c16_i32 : i32
    %5 = vector.broadcast %4 : i32 to vector<8x256xi32>
    %6 = arith.remsi %2, %5 : vector<8x256xi32>
    %c0_i32_2 = arith.constant 0 : i32
    %7 = vector.broadcast %c0_i32_2 : i32 to vector<8x256xi32>
    %8 = arith.cmpi ne, %6, %7 : vector<8x256xi32>
    %c0_i32_3 = arith.constant 0 : i32
    %9 = vector.broadcast %c0_i32_3 : i32 to vector<8x256xi32>
    %10 = arith.cmpi slt, %6, %9 : vector<8x256xi32>
    %c0_i32_4 = arith.constant 0 : i32
    %11 = arith.cmpi slt, %4, %c0_i32_4 : i32
    %12 = vector.broadcast %11 : i1 to vector<8x256xi1>
    %13 = vector.broadcast %12 : vector<8x256xi1> to vector<8x256xi1>
    %14 = arith.xori %10, %13 : vector<8x256xi1>
    %15 = arith.andi %14, %8 : vector<8x256xi1>
    %16 = vector.broadcast %4 : i32 to vector<8x256xi32>
    %17 = arith.addi %6, %16 : vector<8x256xi32>
    %18 = arith.select %15, %17, %6 : vector<8x256xi1>, vector<8x256xi32>
    %c17_i32 = arith.constant 17 : i32
    %19 = tpu.dynamic_rotate %1 by %c17_i32 dim 1 : vector<8x256xf32>, i32 -> vector<8x256xf32>
    %c-16_i32 = arith.constant -16 : i32
    %20 = vector.broadcast %c-16_i32 : i32 to vector<8x256xi32>
    %21 = arith.addi %2, %20 : vector<8x256xi32>
    %c0_i32_5 = arith.constant 0 : i32
    %22 = vector.broadcast %c0_i32_5 : i32 to vector<8x256xi32>
    %23 = arith.cmpi sge, %21, %22 : vector<8x256xi32>
    %c-16_i32_6 = arith.constant -16 : i32
    %24 = vector.broadcast %c-16_i32_6 : i32 to vector<8x256xi32>
    %25 = arith.addi %2, %24 : vector<8x256xi32>
    %c256_i32 = arith.constant 256 : i32
    %26 = vector.broadcast %c256_i32 : i32 to vector<8x256xi32>
    %27 = arith.cmpi slt, %25, %26 : vector<8x256xi32>
    %28 = arith.andi %23, %27 : vector<8x256xi1>
    %c-1_i32 = arith.constant -1 : i32
    %29 = vector.broadcast %c-1_i32 : i32 to vector<8x256xi32>
    %30 = arith.addi %18, %29 : vector<8x256xi32>
    %c0_i32_7 = arith.constant 0 : i32
    %31 = vector.broadcast %c0_i32_7 : i32 to vector<8x256xi32>
    %32 = arith.cmpi sge, %30, %31 : vector<8x256xi32>
    %c-1_i32_8 = arith.constant -1 : i32
    %33 = vector.broadcast %c-1_i32_8 : i32 to vector<8x256xi32>
    %34 = arith.addi %18, %33 : vector<8x256xi32>
    %c16_i32_9 = arith.constant 16 : i32
    %35 = vector.broadcast %c16_i32_9 : i32 to vector<8x256xi32>
    %36 = arith.cmpi slt, %34, %35 : vector<8x256xi32>
    %37 = arith.andi %32, %36 : vector<8x256xi1>
    %38 = arith.andi %28, %37 : vector<8x256xi1>
    %cst = arith.constant 0.000000e+00 : f32
    %39 = vector.broadcast %cst : f32 to vector<8x256xf32>
    %40 = arith.select %38, %19, %39 : vector<8x256xi1>, vector<8x256xf32>
    %c16_i32_10 = arith.constant 16 : i32
    %41 = tpu.dynamic_rotate %1 by %c16_i32_10 dim 1 : vector<8x256xf32>, i32 -> vector<8x256xf32>
    %c-16_i32_11 = arith.constant -16 : i32
    %42 = vector.broadcast %c-16_i32_11 : i32 to vector<8x256xi32>
    %43 = arith.addi %2, %42 : vector<8x256xi32>
    %c0_i32_12 = arith.constant 0 : i32
    %44 = vector.broadcast %c0_i32_12 : i32 to vector<8x256xi32>
    %45 = arith.cmpi sge, %43, %44 : vector<8x256xi32>
    %c-16_i32_13 = arith.constant -16 : i32
    %46 = vector.broadcast %c-16_i32_13 : i32 to vector<8x256xi32>
    %47 = arith.addi %2, %46 : vector<8x256xi32>
    %c256_i32_14 = arith.constant 256 : i32
    %48 = vector.broadcast %c256_i32_14 : i32 to vector<8x256xi32>
    %49 = arith.cmpi slt, %47, %48 : vector<8x256xi32>
    %50 = arith.andi %45, %49 : vector<8x256xi1>
    %cst_15 = arith.constant 0.000000e+00 : f32
    %51 = vector.broadcast %cst_15 : f32 to vector<8x256xf32>
    %52 = arith.select %50, %41, %51 : vector<8x256xi1>, vector<8x256xf32>
    %c15_i32 = arith.constant 15 : i32
    %53 = tpu.dynamic_rotate %1 by %c15_i32 dim 1 : vector<8x256xf32>, i32 -> vector<8x256xf32>
    %c-16_i32_16 = arith.constant -16 : i32
    %54 = vector.broadcast %c-16_i32_16 : i32 to vector<8x256xi32>
    %55 = arith.addi %2, %54 : vector<8x256xi32>
    %c0_i32_17 = arith.constant 0 : i32
    %56 = vector.broadcast %c0_i32_17 : i32 to vector<8x256xi32>
    %57 = arith.cmpi sge, %55, %56 : vector<8x256xi32>
    %c-16_i32_18 = arith.constant -16 : i32
    %58 = vector.broadcast %c-16_i32_18 : i32 to vector<8x256xi32>
    %59 = arith.addi %2, %58 : vector<8x256xi32>
    %c256_i32_19 = arith.constant 256 : i32
    %60 = vector.broadcast %c256_i32_19 : i32 to vector<8x256xi32>
    %61 = arith.cmpi slt, %59, %60 : vector<8x256xi32>
    %62 = arith.andi %57, %61 : vector<8x256xi1>
    %c1_i32_20 = arith.constant 1 : i32
    %63 = vector.broadcast %c1_i32_20 : i32 to vector<8x256xi32>
    %64 = arith.addi %18, %63 : vector<8x256xi32>
    %c0_i32_21 = arith.constant 0 : i32
    %65 = vector.broadcast %c0_i32_21 : i32 to vector<8x256xi32>
    %66 = arith.cmpi sge, %64, %65 : vector<8x256xi32>
    %c1_i32_22 = arith.constant 1 : i32
    %67 = vector.broadcast %c1_i32_22 : i32 to vector<8x256xi32>
    %68 = arith.addi %18, %67 : vector<8x256xi32>
    %c16_i32_23 = arith.constant 16 : i32
    %69 = vector.broadcast %c16_i32_23 : i32 to vector<8x256xi32>
    %70 = arith.cmpi slt, %68, %69 : vector<8x256xi32>
    %71 = arith.andi %66, %70 : vector<8x256xi1>
    %72 = arith.andi %62, %71 : vector<8x256xi1>
    %cst_24 = arith.constant 0.000000e+00 : f32
    %73 = vector.broadcast %cst_24 : f32 to vector<8x256xf32>
    %74 = arith.select %72, %53, %73 : vector<8x256xi1>, vector<8x256xf32>
    %c1_i32_25 = arith.constant 1 : i32
    %75 = tpu.dynamic_rotate %1 by %c1_i32_25 dim 1 : vector<8x256xf32>, i32 -> vector<8x256xf32>
    %c-1_i32_26 = arith.constant -1 : i32
    %76 = vector.broadcast %c-1_i32_26 : i32 to vector<8x256xi32>
    %77 = arith.addi %18, %76 : vector<8x256xi32>
    %c0_i32_27 = arith.constant 0 : i32
    %78 = vector.broadcast %c0_i32_27 : i32 to vector<8x256xi32>
    %79 = arith.cmpi sge, %77, %78 : vector<8x256xi32>
    %c-1_i32_28 = arith.constant -1 : i32
    %80 = vector.broadcast %c-1_i32_28 : i32 to vector<8x256xi32>
    %81 = arith.addi %18, %80 : vector<8x256xi32>
    %c16_i32_29 = arith.constant 16 : i32
    %82 = vector.broadcast %c16_i32_29 : i32 to vector<8x256xi32>
    %83 = arith.cmpi slt, %81, %82 : vector<8x256xi32>
    %84 = arith.andi %79, %83 : vector<8x256xi1>
    %cst_30 = arith.constant 0.000000e+00 : f32
    %85 = vector.broadcast %cst_30 : f32 to vector<8x256xf32>
    %86 = arith.select %84, %75, %85 : vector<8x256xi1>, vector<8x256xf32>
    %c255_i32 = arith.constant 255 : i32
    %87 = tpu.dynamic_rotate %1 by %c255_i32 dim 1 : vector<8x256xf32>, i32 -> vector<8x256xf32>
    %c1_i32_31 = arith.constant 1 : i32
    %88 = vector.broadcast %c1_i32_31 : i32 to vector<8x256xi32>
    %89 = arith.addi %18, %88 : vector<8x256xi32>
    %c0_i32_32 = arith.constant 0 : i32
    %90 = vector.broadcast %c0_i32_32 : i32 to vector<8x256xi32>
    %91 = arith.cmpi sge, %89, %90 : vector<8x256xi32>
    %c1_i32_33 = arith.constant 1 : i32
    %92 = vector.broadcast %c1_i32_33 : i32 to vector<8x256xi32>
    %93 = arith.addi %18, %92 : vector<8x256xi32>
    %c16_i32_34 = arith.constant 16 : i32
    %94 = vector.broadcast %c16_i32_34 : i32 to vector<8x256xi32>
    %95 = arith.cmpi slt, %93, %94 : vector<8x256xi32>
    %96 = arith.andi %91, %95 : vector<8x256xi1>
    %cst_35 = arith.constant 0.000000e+00 : f32
    %97 = vector.broadcast %cst_35 : f32 to vector<8x256xf32>
    %98 = arith.select %96, %87, %97 : vector<8x256xi1>, vector<8x256xf32>
    %c241_i32 = arith.constant 241 : i32
    %99 = tpu.dynamic_rotate %1 by %c241_i32 dim 1 : vector<8x256xf32>, i32 -> vector<8x256xf32>
    %c16_i32_36 = arith.constant 16 : i32
    %100 = vector.broadcast %c16_i32_36 : i32 to vector<8x256xi32>
    %101 = arith.addi %2, %100 : vector<8x256xi32>
    %c0_i32_37 = arith.constant 0 : i32
    %102 = vector.broadcast %c0_i32_37 : i32 to vector<8x256xi32>
    %103 = arith.cmpi sge, %101, %102 : vector<8x256xi32>
    %c16_i32_38 = arith.constant 16 : i32
    %104 = vector.broadcast %c16_i32_38 : i32 to vector<8x256xi32>
    %105 = arith.addi %2, %104 : vector<8x256xi32>
    %c256_i32_39 = arith.constant 256 : i32
    %106 = vector.broadcast %c256_i32_39 : i32 to vector<8x256xi32>
    %107 = arith.cmpi slt, %105, %106 : vector<8x256xi32>
    %108 = arith.andi %103, %107 : vector<8x256xi1>
    %c-1_i32_40 = arith.constant -1 : i32
    %109 = vector.broadcast %c-1_i32_40 : i32 to vector<8x256xi32>
    %110 = arith.addi %18, %109 : vector<8x256xi32>
    %c0_i32_41 = arith.constant 0 : i32
    %111 = vector.broadcast %c0_i32_41 : i32 to vector<8x256xi32>
    %112 = arith.cmpi sge, %110, %111 : vector<8x256xi32>
    %c-1_i32_42 = arith.constant -1 : i32
    %113 = vector.broadcast %c-1_i32_42 : i32 to vector<8x256xi32>
    %114 = arith.addi %18, %113 : vector<8x256xi32>
    %c16_i32_43 = arith.constant 16 : i32
    %115 = vector.broadcast %c16_i32_43 : i32 to vector<8x256xi32>
    %116 = arith.cmpi slt, %114, %115 : vector<8x256xi32>
    %117 = arith.andi %112, %116 : vector<8x256xi1>
    %118 = arith.andi %108, %117 : vector<8x256xi1>
    %cst_44 = arith.constant 0.000000e+00 : f32
    %119 = vector.broadcast %cst_44 : f32 to vector<8x256xf32>
    %120 = arith.select %118, %99, %119 : vector<8x256xi1>, vector<8x256xf32>
    %c240_i32 = arith.constant 240 : i32
    %121 = tpu.dynamic_rotate %1 by %c240_i32 dim 1 : vector<8x256xf32>, i32 -> vector<8x256xf32>
    %c16_i32_45 = arith.constant 16 : i32
    %122 = vector.broadcast %c16_i32_45 : i32 to vector<8x256xi32>
    %123 = arith.addi %2, %122 : vector<8x256xi32>
    %c0_i32_46 = arith.constant 0 : i32
    %124 = vector.broadcast %c0_i32_46 : i32 to vector<8x256xi32>
    %125 = arith.cmpi sge, %123, %124 : vector<8x256xi32>
    %c16_i32_47 = arith.constant 16 : i32
    %126 = vector.broadcast %c16_i32_47 : i32 to vector<8x256xi32>
    %127 = arith.addi %2, %126 : vector<8x256xi32>
    %c256_i32_48 = arith.constant 256 : i32
    %128 = vector.broadcast %c256_i32_48 : i32 to vector<8x256xi32>
    %129 = arith.cmpi slt, %127, %128 : vector<8x256xi32>
    %130 = arith.andi %125, %129 : vector<8x256xi1>
    %cst_49 = arith.constant 0.000000e+00 : f32
    %131 = vector.broadcast %cst_49 : f32 to vector<8x256xf32>
    %132 = arith.select %130, %121, %131 : vector<8x256xi1>, vector<8x256xf32>
    %c239_i32 = arith.constant 239 : i32
    %133 = tpu.dynamic_rotate %1 by %c239_i32 dim 1 : vector<8x256xf32>, i32 -> vector<8x256xf32>
    %c16_i32_50 = arith.constant 16 : i32
    %134 = vector.broadcast %c16_i32_50 : i32 to vector<8x256xi32>
    %135 = arith.addi %2, %134 : vector<8x256xi32>
    %c0_i32_51 = arith.constant 0 : i32
    %136 = vector.broadcast %c0_i32_51 : i32 to vector<8x256xi32>
    %137 = arith.cmpi sge, %135, %136 : vector<8x256xi32>
    %c16_i32_52 = arith.constant 16 : i32
    %138 = vector.broadcast %c16_i32_52 : i32 to vector<8x256xi32>
    %139 = arith.addi %2, %138 : vector<8x256xi32>
    %c256_i32_53 = arith.constant 256 : i32
    %140 = vector.broadcast %c256_i32_53 : i32 to vector<8x256xi32>
    %141 = arith.cmpi slt, %139, %140 : vector<8x256xi32>
    %142 = arith.andi %137, %141 : vector<8x256xi1>
    %c1_i32_54 = arith.constant 1 : i32
    %143 = vector.broadcast %c1_i32_54 : i32 to vector<8x256xi32>
    %144 = arith.addi %18, %143 : vector<8x256xi32>
    %c0_i32_55 = arith.constant 0 : i32
    %145 = vector.broadcast %c0_i32_55 : i32 to vector<8x256xi32>
    %146 = arith.cmpi sge, %144, %145 : vector<8x256xi32>
    %c1_i32_56 = arith.constant 1 : i32
    %147 = vector.broadcast %c1_i32_56 : i32 to vector<8x256xi32>
    %148 = arith.addi %18, %147 : vector<8x256xi32>
    %c16_i32_57 = arith.constant 16 : i32
    %149 = vector.broadcast %c16_i32_57 : i32 to vector<8x256xi32>
    %150 = arith.cmpi slt, %148, %149 : vector<8x256xi32>
    %151 = arith.andi %146, %150 : vector<8x256xi1>
    %152 = arith.andi %142, %151 : vector<8x256xi1>
    %cst_58 = arith.constant 0.000000e+00 : f32
    %153 = vector.broadcast %cst_58 : f32 to vector<8x256xf32>
    %154 = arith.select %152, %133, %153 : vector<8x256xi1>, vector<8x256xf32>
    %155 = tpu.concatenate %40, %52, %74, %86, %1, %98, %120, %132, %154 in 0 : vector<8x256xf32>, vector<8x256xf32>, vector<8x256xf32>, vector<8x256xf32>, vector<8x256xf32>, vector<8x256xf32>, vector<8x256xf32>, vector<8x256xf32>, vector<8x256xf32> -> vector<72x256xf32>
    %156 = arith.truncf %155 : vector<72x256xf32> to vector<72x256xbf16>
    %c0_59 = arith.constant 0 : index
    %c0_60 = arith.constant 0 : index
    %157 = vector.load %arg2[%c0_59, %c0_60] : memref<8x72xbf16, #tpu.memory_space<vmem>>, vector<8x72xbf16>
    %cst_61 = arith.constant dense<0.000000e+00> : vector<8x256xf32>
    %158 = tpu.matmul %157, %156, %cst_61 {dimension_numbers = #tpu.dot_dimension_numbers<[1], [0], [0], [1], [0, 0, 1, 1], [], []>} : vector<8x72xbf16>, vector<72x256xbf16>, vector<8x256xf32> -> vector<8x256xf32>
    %cst_62 = arith.constant 0.000000e+00 : f32
    %159 = vector.broadcast %cst_62 : f32 to vector<8x256xf32>
    %160 = arith.maximumf %158, %159 : vector<8x256xf32>
    %c0_63 = arith.constant 0 : index
    %c0_64 = arith.constant 0 : index
    %c0_65 = arith.constant 0 : index
    %161 = vector.load %arg3[%c0_63, %c0_64, %c0_65] : memref<1x8x256xf32, #tpu.memory_space<vmem>>, vector<1x8x256xf32>
    %162 = vector.shape_cast %161 : vector<1x8x256xf32> to vector<8x256xf32>
    %163 = vector.shape_cast %160 : vector<8x256xf32> to vector<1x8x256xf32>
    tpu.vector_store %arg3[%c0_63, %c0_64, %c0_65], %163 {strides = array<i32>} : memref<1x8x256xf32, #tpu.memory_space<vmem>>, vector<1x8x256xf32>,
    return
  }
  func.func @transform_0(%arg0: i32) -> (i32, i32, i32) {
    %c0_i32 = arith.constant 0 : i32
    %c0_i32_0 = arith.constant 0 : i32
    %c0_i32_1 = arith.constant 0 : i32
    return %arg0, %c0_i32, %c0_i32_0 : i32, i32, i32
  }
  func.func @transform_1(%arg0: i32) -> (i32, i32) {
    %c0_i32 = arith.constant 0 : i32
    %c0_i32_0 = arith.constant 0 : i32
    %c0_i32_1 = arith.constant 0 : i32
    return %c0_i32, %c0_i32_0 : i32, i32
  }
  func.func @transform_2(%arg0: i32) -> (i32, i32, i32) {
    %c0_i32 = arith.constant 0 : i32
    %c0_i32_0 = arith.constant 0 : i32
    %c0_i32_1 = arith.constant 0 : i32
    return %arg0, %c0_i32, %c0_i32_0 : i32, i32, i32
  }
}

</mosaic_0001>

<bundles_post_ra>
// kernel: conv_bn_relu_pallas.1
= control target key start
LH: loop header
LB: loop body
LE: loop exit
PB: predicated region body
PF: predicated region fallthrough
CT: control target
= control target key end

     0   :  { %s538_s9 = smov 0   ;;  %s688_s0 = inlined_call_operand.vmem [shape: f32[2,8,256], index: 0, kind: input, shape index: {}]   ;;  %s689_s1 = inlined_call_operand.vmem [shape: bf16[8,72], index: 1, kind: input, shape index: {}]   ;;  %s690_s2 = inlined_call_operand.vmem [shape: f32[2,8,256], index: 2, kind: output, shape index: {}]  }
   0x1 LB: > { %s408_s10 = sadd.s32 4294967295, %s511_s9   ;;  %p412_p0 = scmp.ge.s32.totalorder %s511_s9, 1  ;;  %s511_s9 = sphi %s538_s9, %s12_s9  }
   0x2   : > { %p112_p1 = scmp.lt.s32.totalorder %s511_s9, 3 }
   0x4   : > { %p113_p2 = pnand %p412_p0, %p112_p1 }
   0x5   : > { %p134_p3 = scmp.lt.s32.totalorder (!%p113_p2), %s408_s10, 1  ;;  %s513_s15 = smov (!%p113_p2), 15   ;;  %v521_v3 = vmov (!%p113_p2), 0   ;;  %v147_v4 = vlaneseq (!%p113_p2)  ;;  %vm522_vm11 = vmmov (!%p113_p2), 1  }
   0x6   : > { %116 = sbr.rel (%p113_p2) target bundleno = 379 (0x17b), region = 28  ;;  %s514_s16 = smov (!%p113_p2), 17   ;;  %340 = vmatprep.mubr.bf16.mxu0 (!%p113_p2), %v521_v3 }
   0x7   : > { %s515_s17 = smov (!%p113_p2), 1   ;;  %s516_s18 = smov (!%p113_p2), 16   ;;  %v560_v5 = vand.u32 (!%p113_p2), 127, %v147_v4 }
   0x8   : > { %s517_s19 = smov (!%p113_p2), 127   ;;  %s518_s20 = smov (!%p113_p2), 113  }
   0x9   : > { %s519_s21 = smov (!%p113_p2), 112   ;;  %s520_s22 = smov (!%p113_p2), 111   ;;  %v149_v6 = vadd.s32 (!%p113_p2), 128, %v560_v5  ;;  %v154_v7 = vand.u32 (!%p113_p2), 15, %v560_v5  ;;  %v181_v9 = vadd.s32 (!%p113_p2), 4294967280, %v560_v5  ;;  %vm214_vm2 = vcmp.lt.s32.totalorder (!%p113_p2), %v560_v5, 15 }
   0xa   : > { %vm233_vm3 = vcmp.lt.s32.totalorder (!%p113_p2), %v560_v5, 1  ;;  %vm178_vm4 = vcmp.lt.s32.totalorder (!%p113_p2), %v560_v5, 17  ;;  %vm205_vm6 = vcmp.lt.s32.totalorder (!%p113_p2), %v560_v5, 16  ;;  %vm242_vm7 = vcmp.lt.s32.totalorder (!%p113_p2), %v560_v5, 127 }
   0xb   : > { %v161_v8 = vand.u32 (!%p113_p2), 15, %v149_v6  ;;  %v565_v10 = vadd.s32 (!%p113_p2), 4294967295, %v154_v7  ;;  %v569_v14 = vadd.s32 (!%p113_p2), 1, %v154_v7  ;;  %vm183_vm0 = vcmp.ge.s32.totalorder (!%p113_p2), %v181_v9, 0 }
   0xc   : > { %vm251_vm9 = vcmp.lt.s32.totalorder (!%p113_p2), %v560_v5, 113  ;;  %v255_v30 = vadd.s32 (!%p113_p2), 16, %v149_v6 }
   0xd   : > { %s700_s10 = smov (!%p134_p3, %s408_s10), 1  ;;  %v567_v11 = vadd.s32 4294967295, %v161_v8  ;;  %vm191_vm1 = vcmp.ge.s32.totalorder %v565_v10, 0  ;;  %v572_v15 = vadd.s32 1, %v161_v8  ;;  %vm221_vm10 = vcmp.lt.s32.totalorder %v569_v14, 16 }
   0xe   : > { %s445_s11 = sshll.u32 %s700_s10, 4  ;;  %vm583_vm8 = vmand %vm183_vm0, %vm191_vm1 }
   0xf   : > { %s138_s14 = scalar_lea.vmem %s688_s0, %s445_s11  ;;  %vm192_vm5 = vcmp.ge.s32.totalorder %v567_v11, 0  ;;  %vm222_vm13 = vcmp.lt.s32.totalorder %v572_v15, 16  ;;  %vm612_vm14 = vmpackc.low %vm183_vm0, %vm583_vm8  ;;  %s143_s27 = scalar_lea.vmem %s690_s2, %s445_s11 }
  0x10   : > { %v554_v0 = vld [vmem:[%s138_s14] sm:$0xff]  ;;  %v556_v1 = vld [vmem:[%s138_s14 + $0x8] sm:$0xff]  ;;  %vm596_vm12 = vmpackc.low %vm522_vm11, %vm192_vm5 }
  0x11   : > { %v475_v2 = vpack.i.bf16 %v556_v1, %v554_v0  ;;  %vm225_vm15 = vmand %vm183_vm0, %vm221_vm10  ;;  %vm270_vm0 = vcmp.lt.s32.totalorder %v560_v5, 112 }
  0x12   : > { %vm429_vm8 = vmpackc.low %vm222_vm13, %vm522_vm11 }
  0x13   : > { %476 = vrot.lane.b32.xlu1 %v475_v2, %s513_s15  ;;  %466 = vrot.lane.b32.xlu0 %v475_v2, %s514_s16 }
  0x17   : > { %481 = vrot.lane.b32.xlu1 %v475_v2, %s515_s17  ;;  %471 = vrot.lane.b32.xlu0 %v475_v2, %s516_s18 }
  0x1b   : > { %486 = vrot.lane.b32.xlu0 %v475_v2, %s517_s19  ;;  %491 = vrot.lane.b32.xlu1 %v475_v2, %s518_s20 }
  0x1f   : > { %496 = vrot.lane.b32.xlu0 %v475_v2, %s519_s21  ;;  %501 = vrot.lane.b32.xlu1 %v475_v2, %s520_s22 }
  0x85   : > { %v477_v12 = vpop.permute.xlu1 %476  ;;  %v467_v13 = vpop.permute.xlu0 %466 }
  0x86   : > { %v479_v16 = vunpack.i.h.bf16 %v477_v12  ;;  %v478_v17 = vunpack.i.l.bf16 %v477_v12  ;;  %v469_v18 = vunpack.i.h.bf16 %v467_v13  ;;  %v468_v19 = vunpack.i.l.bf16 %v467_v13 }
  0x88   : > { %v215_v27 = vsel %vm214_vm2, %v478_v17, %v479_v16  ;;  %v179_v28 = vsel %vm178_vm4, %v468_v19, %v469_v18  ;;  %v180_v33 = vsel %vm178_vm4, %v469_v18, %v468_v19  ;;  %v216_v36 = vsel %vm214_vm2, %v479_v16, %v478_v17  ;;  %vm423_vm4 = vmpackc.low %vm192_vm5, %vm222_vm13 }
  0x89   : > { %v482_v20 = vpop.permute.xlu1 %481  ;;  %v472_v21 = vpop.permute.xlu0 %471  ;;  %vm259_vm2 = vcmp.lt.s32.totalorder %v255_v30, 256 }
  0x8a   : > { %v484_v23 = vunpack.i.h.bf16 %v482_v20  ;;  %v483_v24 = vunpack.i.l.bf16 %v482_v20  ;;  %v474_v25 = vunpack.i.h.bf16 %v472_v21  ;;  %v473_v26 = vunpack.i.l.bf16 %v472_v21 }
  0x8c   : > { %v234_v31 = vsel %vm233_vm3, %v483_v24, %v484_v23  ;;  %v206_v32 = vsel %vm205_vm6, %v473_v26, %v474_v25  ;;  %v207_v34 = vsel %vm205_vm6, %v474_v25, %v473_v26  ;;  %v235_v37 = vsel %vm233_vm3, %v484_v23, %v483_v24  ;;  %vm636_vm3 = vmpackc.low %vm191_vm1, %vm225_vm15 }
  0x8d   : > { %v418_v38 = vpack.c.bf16 %v206_v32, %v179_v28  ;;  %v487_v39 = vpop.permute.xlu0 %486  ;;  %v421_v40 = vpack.c.bf16 %v207_v34, %v180_v33  ;;  %v492_v41 = vpop.permute.xlu1 %491  ;;  %v424_v46 = vpack.c.bf16 %v234_v31, %v215_v27  ;;  %vm279_vm6 = vcmp.lt.s32.totalorder %v560_v5, 111  ;;  %v296_v5 = vld [vmem:[%s689_s1] sm:$0xf] }
  0x8e   : > { %v489_v42 = vunpack.i.h.bf16 %v487_v39  ;;  %v488_v43 = vunpack.i.l.bf16 %v487_v39  ;;  %v494_v44 = vunpack.i.h.bf16 %v492_v41  ;;  %v493_v45 = vunpack.i.l.bf16 %v492_v41 }
  0x8f   : > { %419 = vmatprep.subr.msk.bf16.mxu0 %vm596_vm12, %v418_v38  ;;  %v427_v49 = vpack.c.bf16 %v235_v37, %v216_v36  ;;  %vm283_vm12 = vmand %vm259_vm2, %vm222_vm13  ;;  %vm301_vm15 = vcmask 1043456  }
  0x90   : > { %v244_v47 = vsel %vm242_vm7, %v489_v42, %v488_v43  ;;  %422 = vmatpush1.bf16.msk.msra.mxu0 %vm612_vm14, %v421_v40  ;;  %v243_v50 = vsel %vm242_vm7, %v488_v43, %v489_v42  ;;  %v253_v52 = vsel %vm251_vm9, %v494_v44, %v493_v45  ;;  %vm263_vm7 = vmand %vm259_vm2, %vm192_vm5  ;;  %v252_v2 = vsel %vm251_vm9, %v493_v45, %v494_v44 }
  0x91   : > { %v430_v51 = vpack.c.bf16 %v244_v47, %v556_v1  ;;  %425 = vmatprep.subr.msk.bf16.mxu0 %vm423_vm4, %v424_v46  ;;  %v497_v53 = vpop.permute.xlu0 %496  ;;  %v502_v54 = vpop.permute.xlu1 %501  ;;  %v433_v59 = vpack.c.bf16 %v243_v50, %v554_v0  ;;  %vm432_vm5 = vmpackc.low %vm221_vm10, %vm522_vm11  ;;  %vm297_vm9 = vcmask 588800  }
  0x92   : > { %v499_v55 = vunpack.i.h.bf16 %v497_v53  ;;  %v498_v56 = vunpack.i.l.bf16 %v497_v53  ;;  %v504_v57 = vunpack.i.h.bf16 %v502_v54  ;;  %v503_v58 = vunpack.i.l.bf16 %v502_v54  ;;  %vm435_vm13 = vmpackc.low %vm259_vm2, %vm263_vm7 }
  0x93   : > { %vm438_vm14 = vmpackc.low %vm522_vm11, %vm191_vm1 }
  0x94   : > { %v272_v60 = vsel %vm270_vm0, %v499_v55, %v498_v56  ;;  %428 = vmatpush1.bf16.msk.msra.mxu0 %vm636_vm3, %v427_v49  ;;  %v281_v61 = vsel %vm279_vm6, %v504_v57, %v503_v58  ;;  %v280_v62 = vsel %vm279_vm6, %v503_v58, %v504_v57  ;;  %v271_v3 = vsel %vm270_vm0, %v498_v56, %v499_v55 }
  0x95   : > { %v436_v63 = vpack.c.bf16 %v272_v60, %v253_v52  ;;  %431 = vmatprep.subr.msk.bf16.mxu0 %vm429_vm8, %v430_v51  ;;  %v285_v0 = vsel %vm283_vm12, %v281_v61, 0.0  ;;  %v284_v1 = vsel %vm221_vm10, %v280_v62, 0.0  ;;  %v439_v7 = vpack.c.bf16 %v271_v3, %v252_v2 }
  0x96   : > { %v295_v4 = vpack.c.bf16 %v285_v0, %v285_v0  ;;  %v294_v6 = vpack.c.bf16 %v284_v1, %v284_v1 }
  0x98   : > { %434 = vmatpush1.bf16.msk.msra.mxu0 %vm432_vm5, %v433_v59  ;;  %v303_v8 = vsel %vm301_vm15, %v294_v6, 0 }
  0x99   : > { %437 = vmatprep.subr.msk.bf16.mxu0 %vm435_vm13, %v436_v63 }
  0x9c   : > { %440 = vmatpush1.bf16.msk.msra.mxu0 %vm438_vm14, %v439_v7 }
  0x9d   : > { %441 = vmatprep.subr.msk.bf16.mxu0 %vm301_vm15, %v295_v4 }
  0xa0   : > { %317 = vmatpush1.bf16.msra.mxu0 %v303_v8 }
  0xa3   : > { %442 = vmatmul.mubr.msk.bf16.vlgmr.msra.gmra.mrb[0].mxu0 %vm297_vm9, %v296_v5 }
 0x176   : > { %v342_v9 = vpop.f32.mrb[0].mxu0 }
 0x177   : > { %v349_v10 = vmax.f32 %v342_v9, 0.0  ;;  %v344_v11 = vpop.f32.mrb[1].mxu0 }
 0x178   : > { %v350_v12 = vmax.f32 %v344_v11, 0.0  ;;  %v346_v13 = vpop.f32.mrb[2].mxu0 }
 0x179   : > { %351 = vst [vmem:[%s143_s27] sm:$0xff] %v349_v10  ;;  %v347_v14 = vpop.f32.mrb[3].mxu0 }
 0x17a   : > { %352 = vst [vmem:[%s143_s27 + $0x8] sm:$0xff] %v350_v12 }
 0x17b PF: > { %s12_s9 = sadd.s32 1, %s511_s9  }
 0x17c   : > { %p9_p4 = scmp.ge.s32.totalorder %s12_s9, 4  }
 0x17e   :  { %11 = sbr.rel (!%p9_p4) target bundleno = 1 (0x1), region = 58 }

</bundles_post_ra>
